<compile_context>
chip_gen: v5e
topology: v5e:2x2
jax: 0.10.0
libtpu: 0.0.40
codegen_flags: <defaults>
</compile_context>

<pallas_src>
import functools

import jax
import jax.numpy as jnp
from jax.experimental import pallas as pl
from jax.experimental.pallas import tpu as pltpu


def _round_up(n, m):
    return ((n + m - 1) // m) * m


def _tpu_vmem_capacity_bytes():
    """Physical VMEM per TensorCore; conservative fallback if the query fails."""
    try:
        info = pltpu.get_tpu_info()
        for name in ("vmem_capacity_bytes", "vmem_size_bytes", "vmem_bytes"):
            cap = getattr(info, name, None)
            if cap:
                return int(cap)
    except Exception:
        pass
    return 64 * 1024 * 1024  # v7x per-TC size: safe lower bound on every generation


def _pick_chunk(d_hid, max_chunk):
    """Largest 128-multiple chunk <= max_chunk that divides d_hid exactly (a ragged
    reduction chunk would accumulate garbage from the padded region)."""
    if d_hid <= max_chunk:
        return d_hid
    for ck in (max_chunk, 4096, 2048, 1024, 512, 256, 128):
        if ck <= max_chunk and ck % 128 == 0 and d_hid % ck == 0:
            return ck
    return d_hid  # no clean divisor -> single chunk


def ffn_kernel(x_ref, w1_ref, b1_ref, w2_ref, b2_ref, g_ref, beta_ref,
               o_ref, acc_ref, *, eps):
    c = pl.program_id(1)

    @pl.when(c == 0)
    def _():
        acc_ref[...] = jnp.zeros_like(acc_ref)

    # conv1d(d_in -> d_hid, k=1) chunk == x @ W1^T[:, chunk] + b1[chunk].
    # Feed the MXU in the weight dtype (bf16 weights -> fast path), accumulate in f32.
    x = x_ref[...]
    lhs = x if x.dtype == w1_ref.dtype else x.astype(w1_ref.dtype)
    h = jnp.dot(lhs, w1_ref[...], preferred_element_type=jnp.float32)
    h = jnp.maximum(h + b1_ref[...].astype(jnp.float32), 0.0)          # ReLU in f32

    # conv1d(d_hid -> d_in, k=1) chunk == h[chunk] @ W2^T[chunk, :]; accumulate in f32.
    acc_ref[...] += jnp.dot(h.astype(w2_ref.dtype), w2_ref[...],
                            preferred_element_type=jnp.float32)

    @pl.when(c == pl.num_programs(1) - 1)
    def _():
        # bias + residual in f32, then LayerNorm over d_in (PyTorch eps default 1e-5).
        y = acc_ref[...] + b2_ref[...].astype(jnp.float32) + x_ref[...].astype(jnp.float32)
        mean = jnp.mean(y, axis=-1, keepdims=True)
        centered = y - mean
        var = jnp.mean(centered * centered, axis=-1, keepdims=True)    # two-pass variance
        out = centered * jax.lax.rsqrt(var + eps)
        out = out * g_ref[...].astype(jnp.float32) + beta_ref[...].astype(jnp.float32)
        o_ref[...] = out.astype(o_ref.dtype)


def prepare_params(w1, b1, w2, b2, gamma, beta, *, mxu_dtype=None):
    """One-time (model-load) layout work: transpose Conv1d weights, reshape vectors,
    optionally cast the matmul weights (e.g. jnp.bfloat16) for the fast MXU path.
    w1: (d_hid, d_in), w2: (d_in, d_hid) with the kernel dim already squeezed."""
    w1t = jnp.asarray(w1).T          # (d_in, d_hid)
    w2t = jnp.asarray(w2).T          # (d_hid, d_in)
    if mxu_dtype is not None:
        w1t = w1t.astype(mxu_dtype)
        w2t = w2t.astype(mxu_dtype)
    return {
        "w1t": w1t,
        "b1": jnp.asarray(b1).reshape(1, -1),
        "w2t": w2t,
        "b2": jnp.asarray(b2).reshape(1, -1),
        "gamma": jnp.asarray(gamma).reshape(1, -1),
        "beta": jnp.asarray(beta).reshape(1, -1),
    }


def _resident_spec(shape, index_map, single_buffer):
    # Constant-index (resident) operands don't need the default 2-deep pipelining;
    # pl.Buffered(1) halves their VMEM footprint when supported.
    if single_buffer and hasattr(pl, "Buffered"):
        try:
            return pl.BlockSpec(shape, index_map, pipeline_mode=pl.Buffered(1))
        except TypeError:
            pass
    return pl.BlockSpec(shape, index_map)


def positionwise_ffn(x, params, *, eps=1e-5, tm=None, max_chunk=2048):
    """x: (B, L, d_in) -> (B, L, d_in). params from prepare_params()."""
    B, L, d_in = x.shape
    w1t, b1 = params["w1t"], params["b1"]
    w2t, b2 = params["w2t"], params["b2"]
    gamma, beta = params["gamma"], params["beta"]
    d_hid = w1t.shape[1]
    rows = B * L
    x2 = x.reshape(rows, d_in)                 # free reshape; no padding / extra HBM pass

    vmem_cap = _tpu_vmem_capacity_bytes()
    if tm is None:
        # 128 MiB parts (v5e/v6e): larger row tile amortizes per-step overhead;
        # 64 MiB parts (v7x): stay at 256 to leave room for the f32 intermediates.
        tm = 512 if vmem_cap >= 96 * 1024 * 1024 else 256
    tm_eff = min(tm, _round_up(rows, 8))

    ck = _pick_chunk(d_hid, max_chunk)
    n_chunks = d_hid // ck
    single_buffer = (n_chunks == 1)            # weights fully resident -> 1 buffer is enough

    wb = w1t.dtype.itemsize
    xb = x.dtype.itemsize

    def vmem_estimate(tm_):
        w_bufs = 1 if single_buffer else 2
        weight_bytes = w_bufs * (d_in * ck + ck * d_in + ck) * wb      # W1^T, W2^T, b1 blocks
        small_bytes = 2 * 3 * d_in * 4                                 # b2 / gamma / beta
        act_bytes = 2 * tm_ * d_in * (xb + xb)                         # x + out tiles (double-buffered)
        acc_bytes = tm_ * d_in * 4                                     # f32 accumulator scratch
        inter_bytes = (tm_ * ck * 4                                    # h in f32
                       + tm_ * ck * wb                                 # h cast for 2nd matmul
                       + 2 * tm_ * d_in * 4)                           # y / centered in f32
        return weight_bytes + small_bytes + act_bytes + acc_bytes + inter_bytes

    # Shrink the row tile if the estimate doesn't fit ~80% of physical VMEM.
    while tm_eff > 64 and vmem_estimate(tm_eff) > 0.8 * vmem_cap:
        tm_eff = max(64, tm_eff // 2)
    vmem_limit = int(min(max(vmem_estimate(tm_eff) + (8 << 20), 32 << 20),
                         int(0.85 * vmem_cap)))

    grid = (pl.cdiv(rows, tm_eff), n_chunks)

    cost = pl.CostEstimate(
        flops=4 * rows * d_in * d_hid,                                 # two matmuls
        transcendentals=0,
        bytes_accessed=(2 * rows * d_in * xb                           # x in + out
                        + 2 * d_in * d_hid * wb                        # W1^T + W2^T
                        + (d_hid + 3 * d_in) * 4),                     # biases / gamma / beta
    )

    def run(sb):
        in_specs = [
            pl.BlockSpec((tm_eff, d_in), lambda i, c: (i, 0)),         # x rows (streamed)
            _resident_spec((d_in, ck), lambda i, c: (0, c), sb),       # W1^T chunk
            _resident_spec((1, ck), lambda i, c: (0, c), sb),          # b1 chunk
            _resident_spec((ck, d_in), lambda i, c: (c, 0), sb),       # W2^T chunk
            _resident_spec((1, d_in), lambda i, c: (0, 0), sb),        # b2
            _resident_spec((1, d_in), lambda i, c: (0, 0), sb),        # gamma
            _resident_spec((1, d_in), lambda i, c: (0, 0), sb),        # beta
        ]
        return pl.pallas_call(
            functools.partial(ffn_kernel, eps=eps),
            out_shape=jax.ShapeDtypeStruct((rows, d_in), x.dtype),
            grid_spec=pltpu.PrefetchScalarGridSpec(
                num_scalar_prefetch=0,
                grid=grid,
                in_specs=in_specs,
                out_specs=pl.BlockSpec((tm_eff, d_in), lambda i, c: (i, 0)),
                scratch_shapes=[pltpu.VMEM((tm_eff, d_in), jnp.float32)],
            ),
            compiler_params=pltpu.CompilerParams(
                dimension_semantics=("parallel", "arbitrary"),
                vmem_limit_bytes=vmem_limit,
            ),
            cost_estimate=cost,
        )(x2, w1t, b1, w2t, b2, gamma, beta)

    try:
        out = run(single_buffer)
    except Exception:
        if not single_buffer:
            raise
        out = run(False)   # pl.Buffered(1) not accepted on this jax/libtpu: default buffering

    return out.reshape(B, L, d_in)


if __name__ == "__main__":
    # Small shapes consistent with the module; d_in a multiple of 128 -> lane-dense stores.
    B, L, d_in, d_hid = 2, 8, 128, 256

    key = jax.random.PRNGKey(0)
    kx, kw1, kb1, kw2, kb2 = jax.random.split(key, 5)

    x = jax.random.normal(kx, (B, L, d_in), dtype=jnp.float32)

    # Synthetic params, shapes matching nn.Conv1d(d_in,d_hid,1) / nn.Conv1d(d_hid,d_in,1) / LayerNorm(d_in).
    w1 = jax.random.normal(kw1, (d_hid, d_in), dtype=jnp.float32) * 0.1
    b1 = jax.random.normal(kb1, (d_hid,), dtype=jnp.float32) * 0.1
    w2 = jax.random.normal(kw2, (d_in, d_hid), dtype=jnp.float32) * 0.1
    b2 = jax.random.normal(kb2, (d_in,), dtype=jnp.float32) * 0.1
    gamma = jnp.ones((d_in,), dtype=jnp.float32)
    beta = jnp.zeros((d_in,), dtype=jnp.float32)

    params = prepare_params(w1, b1, w2, b2, gamma, beta)   # one-time layout work

    # Reference in plain JAX.
    h_ref = jnp.maximum(x @ w1.T + b1, 0.0)
    y_ref = h_ref @ w2.T + b2 + x
    mu = y_ref.mean(-1, keepdims=True)
    var = ((y_ref - mu) ** 2).mean(-1, keepdims=True)
    ref = (y_ref - mu) / jnp.sqrt(var + 1e-5) * gamma + beta

    # Path 1: single chunk -> weights fully resident (single-buffered when supported).
    out1 = positionwise_ffn(x, params)
    jax.block_until_ready(out1)

    # Path 2: chunked d_hid reduction with the f32 accumulator (2 chunks of 128).
    out2 = positionwise_ffn(x, params, max_chunk=128)
    jax.block_until_ready(out2)

    assert out1.shape == (B, L, d_in)
    assert jnp.allclose(out1, ref, atol=1e-4, rtol=1e-4)
    assert jnp.allclose(out2, ref, atol=1e-4, rtol=1e-4)
    print("KERNEL_OK")
</pallas_src>

<mosaic_0001>
module attributes {stable_mosaic.version = 11 : i64} {
  func.func @ffn_kernel(%arg0: i32, %arg1: i32, %arg2: memref<16x128xf32, #tpu.memory_space<vmem>>, %arg3: memref<128x256xf32, #tpu.memory_space<vmem>>, %arg4: memref<1x256xf32, #tpu.memory_space<vmem>>, %arg5: memref<256x128xf32, #tpu.memory_space<vmem>>, %arg6: memref<1x128xf32, #tpu.memory_space<vmem>>, %arg7: memref<1x128xf32, #tpu.memory_space<vmem>>, %arg8: memref<1x128xf32, #tpu.memory_space<vmem>>, %arg9: memref<16x128xf32, #tpu.memory_space<vmem>>, %arg10: memref<16x128xf32, #tpu.memory_space<vmem>>) attributes {dimension_semantics = [#tpu.dimension_semantics<parallel>, #tpu.dimension_semantics<arbitrary>], iteration_bounds = array<i64: 1, 1>, scalar_prefetch = 0 : i64, scratch_operands = 1 : i64, tpu.core_type = #tpu.core_type<tc>, window_params = [{transform_indices = @transform_0, window_bounds = array<i64: 16, 128>}, {pipeline_mode = #tpu.pipeline_mode<synchronous>, transform_indices = @transform_1, window_bounds = array<i64: 128, 256>}, {pipeline_mode = #tpu.pipeline_mode<synchronous>, transform_indices = @transform_2, window_bounds = array<i64: 1, 256>}, {pipeline_mode = #tpu.pipeline_mode<synchronous>, transform_indices = @transform_3, window_bounds = array<i64: 256, 128>}, {pipeline_mode = #tpu.pipeline_mode<synchronous>, transform_indices = @transform_4, window_bounds = array<i64: 1, 128>}, {pipeline_mode = #tpu.pipeline_mode<synchronous>, transform_indices = @transform_5, window_bounds = array<i64: 1, 128>}, {pipeline_mode = #tpu.pipeline_mode<synchronous>, transform_indices = @transform_6, window_bounds = array<i64: 1, 128>}, {transform_indices = @transform_7, window_bounds = array<i64: 16, 128>}]} {
    %c0_i32 = arith.constant 0 : i32
    %0 = arith.cmpi eq, %arg1, %c0_i32 : i32
    %1 = arith.extui %0 : i1 to i32
    %c0_i32_0 = arith.constant 0 : i32
    %2 = arith.cmpi ne, %1, %c0_i32_0 : i32
    scf.if %2 {
      %cst_16 = arith.constant 0.000000e+00 : f32
      %19 = vector.broadcast %cst_16 : f32 to vector<16x128xf32>
      %c0_17 = arith.constant 0 : index
      %c0_18 = arith.constant 0 : index
      %20 = vector.load %arg10[%c0_17, %c0_18] : memref<16x128xf32, #tpu.memory_space<vmem>>, vector<16x128xf32>
      tpu.vector_store %arg10[%c0_17, %c0_18], %19 {strides = array<i32>} : memref<16x128xf32, #tpu.memory_space<vmem>>, vector<16x128xf32>,
    } else {
    }
    %c0 = arith.constant 0 : index
    %c0_1 = arith.constant 0 : index
    %3 = vector.load %arg2[%c0, %c0_1] : memref<16x128xf32, #tpu.memory_space<vmem>>, vector<16x128xf32>
    %c0_2 = arith.constant 0 : index
    %c0_3 = arith.constant 0 : index
    %4 = vector.load %arg3[%c0_2, %c0_3] : memref<128x256xf32, #tpu.memory_space<vmem>>, vector<128x256xf32>
    %cst = arith.constant dense<0.000000e+00> : vector<16x256xf32>
    %5 = tpu.matmul %3, %4, %cst {dimension_numbers = #tpu.dot_dimension_numbers<[1], [0], [0], [1], [0, 0, 1, 1], [], []>} : vector<16x128xf32>, vector<128x256xf32>, vector<16x256xf32> -> vector<16x256xf32>
    %c0_4 = arith.constant 0 : index
    %c0_5 = arith.constant 0 : index
    %6 = vector.load %arg4[%c0_4, %c0_5] : memref<1x256xf32, #tpu.memory_space<vmem>>, vector<1x256xf32>
    %7 = vector.broadcast %6 : vector<1x256xf32> to vector<16x256xf32>
    %8 = arith.addf %5, %7 : vector<16x256xf32>
    %cst_6 = arith.constant 0.000000e+00 : f32
    %9 = vector.broadcast %cst_6 : f32 to vector<16x256xf32>
    %10 = arith.maximumf %8, %9 : vector<16x256xf32>
    %c0_7 = arith.constant 0 : index
    %c0_8 = arith.constant 0 : index
    %11 = vector.load %arg10[%c0_7, %c0_8] : memref<16x128xf32, #tpu.memory_space<vmem>>, vector<16x128xf32>
    %c0_9 = arith.constant 0 : index
    %c0_10 = arith.constant 0 : index
    %12 = vector.load %arg5[%c0_9, %c0_10] : memref<256x128xf32, #tpu.memory_space<vmem>>, vector<256x128xf32>
    %cst_11 = arith.constant dense<0.000000e+00> : vector<16x128xf32>
    %13 = tpu.matmul %10, %12, %cst_11 {dimension_numbers = #tpu.dot_dimension_numbers<[1], [0], [0], [1], [0, 0, 1, 1], [], []>} : vector<16x256xf32>, vector<256x128xf32>, vector<16x128xf32> -> vector<16x128xf32>
    %14 = arith.addf %11, %13 : vector<16x128xf32>
    %c0_12 = arith.constant 0 : index
    %c0_13 = arith.constant 0 : index
    %15 = vector.load %arg10[%c0_12, %c0_13] : memref<16x128xf32, #tpu.memory_space<vmem>>, vector<16x128xf32>
    tpu.vector_store %arg10[%c0_12, %c0_13], %14 {strides = array<i32>} : memref<16x128xf32, #tpu.memory_space<vmem>>, vector<16x128xf32>,
    %c0_i32_14 = arith.constant 0 : i32
    %16 = arith.cmpi eq, %arg1, %c0_i32_14 : i32
    %17 = arith.extui %16 : i1 to i32
    %c0_i32_15 = arith.constant 0 : i32
    %18 = arith.cmpi ne, %17, %c0_i32_15 : i32
    scf.if %18 {
      %c0_16 = arith.constant 0 : index
      %c0_17 = arith.constant 0 : index
      %19 = vector.load %arg10[%c0_16, %c0_17] : memref<16x128xf32, #tpu.memory_space<vmem>>, vector<16x128xf32>
      %c0_18 = arith.constant 0 : index
      %c0_19 = arith.constant 0 : index
      %20 = vector.load %arg6[%c0_18, %c0_19] : memref<1x128xf32, #tpu.memory_space<vmem>>, vector<1x128xf32>
      %21 = vector.broadcast %20 : vector<1x128xf32> to vector<16x128xf32>
      %22 = arith.addf %19, %21 : vector<16x128xf32>
      %c0_20 = arith.constant 0 : index
      %c0_21 = arith.constant 0 : index
      %23 = vector.load %arg2[%c0_20, %c0_21] : memref<16x128xf32, #tpu.memory_space<vmem>>, vector<16x128xf32>
      %24 = arith.addf %22, %23 : vector<16x128xf32>
      %cst_22 = arith.constant dense<0.000000e+00> : vector<16xf32>
      %25 = vector.multi_reduction <add>, %24, %cst_22 [1] : vector<16x128xf32> to vector<16xf32>
      %26 = vector.shape_cast %25 : vector<16xf32> to vector<16x1xf32>
      %cst_23 = arith.constant 1.280000e+02 : f32
      %27 = vector.broadcast %cst_23 : f32 to vector<16x1xf32>
      %28 = arith.divf %26, %27 : vector<16x1xf32>
      %29 = vector.broadcast %28 : vector<16x1xf32> to vector<16x128xf32>
      %30 = arith.subf %24, %29 : vector<16x128xf32>
      %31 = arith.mulf %30, %30 : vector<16x128xf32>
      %cst_24 = arith.constant dense<0.000000e+00> : vector<16xf32>
      %32 = vector.multi_reduction <add>, %31, %cst_24 [1] : vector<16x128xf32> to vector<16xf32>
      %33 = vector.shape_cast %32 : vector<16xf32> to vector<16x1xf32>
      %cst_25 = arith.constant 1.280000e+02 : f32
      %34 = vector.broadcast %cst_25 : f32 to vector<16x1xf32>
      %35 = arith.divf %33, %34 : vector<16x1xf32>
      %cst_26 = arith.constant 9.99999974E-6 : f32
      %36 = vector.broadcast %cst_26 : f32 to vector<16x1xf32>
      %37 = arith.addf %35, %36 : vector<16x1xf32>
      %38 = math.rsqrt %37 : vector<16x1xf32>
      %39 = vector.broadcast %38 : vector<16x1xf32> to vector<16x128xf32>
      %40 = arith.mulf %30, %39 : vector<16x128xf32>
      %c0_27 = arith.constant 0 : index
      %c0_28 = arith.constant 0 : index
      %41 = vector.load %arg7[%c0_27, %c0_28] : memref<1x128xf32, #tpu.memory_space<vmem>>, vector<1x128xf32>
      %42 = vector.broadcast %41 : vector<1x128xf32> to vector<16x128xf32>
      %43 = arith.mulf %40, %42 : vector<16x128xf32>
      %c0_29 = arith.constant 0 : index
      %c0_30 = arith.constant 0 : index
      %44 = vector.load %arg8[%c0_29, %c0_30] : memref<1x128xf32, #tpu.memory_space<vmem>>, vector<1x128xf32>
      %45 = vector.broadcast %44 : vector<1x128xf32> to vector<16x128xf32>
      %46 = arith.addf %43, %45 : vector<16x128xf32>
      %c0_31 = arith.constant 0 : index
      %c0_32 = arith.constant 0 : index
      %47 = vector.load %arg9[%c0_31, %c0_32] : memref<16x128xf32, #tpu.memory_space<vmem>>, vector<16x128xf32>
      tpu.vector_store %arg9[%c0_31, %c0_32], %46 {strides = array<i32>} : memref<16x128xf32, #tpu.memory_space<vmem>>, vector<16x128xf32>,
    } else {
    }
    return
  }
  func.func @transform_0(%arg0: i32, %arg1: i32) -> (i32, i32) {
    %c0_i32 = arith.constant 0 : i32
    %c0_i32_0 = arith.constant 0 : i32
    return %arg0, %c0_i32 : i32, i32
  }
  func.func @transform_1(%arg0: i32, %arg1: i32) -> (i32, i32) {
    %c0_i32 = arith.constant 0 : i32
    %c0_i32_0 = arith.constant 0 : i32
    return %c0_i32, %arg1 : i32, i32
  }
  func.func @transform_2(%arg0: i32, %arg1: i32) -> (i32, i32) {
    %c0_i32 = arith.constant 0 : i32
    %c0_i32_0 = arith.constant 0 : i32
    return %c0_i32, %arg1 : i32, i32
  }
  func.func @transform_3(%arg0: i32, %arg1: i32) -> (i32, i32) {
    %c0_i32 = arith.constant 0 : i32
    %c0_i32_0 = arith.constant 0 : i32
    return %arg1, %c0_i32 : i32, i32
  }
  func.func @transform_4(%arg0: i32, %arg1: i32) -> (i32, i32) {
    %c0_i32 = arith.constant 0 : i32
    %c0_i32_0 = arith.constant 0 : i32
    %c0_i32_1 = arith.constant 0 : i32
    return %c0_i32, %c0_i32_0 : i32, i32
  }
  func.func @transform_5(%arg0: i32, %arg1: i32) -> (i32, i32) {
    %c0_i32 = arith.constant 0 : i32
    %c0_i32_0 = arith.constant 0 : i32
    %c0_i32_1 = arith.constant 0 : i32
    return %c0_i32, %c0_i32_0 : i32, i32
  }
  func.func @transform_6(%arg0: i32, %arg1: i32) -> (i32, i32) {
    %c0_i32 = arith.constant 0 : i32
    %c0_i32_0 = arith.constant 0 : i32
    %c0_i32_1 = arith.constant 0 : i32
    return %c0_i32, %c0_i32_0 : i32, i32
  }
  func.func @transform_7(%arg0: i32, %arg1: i32) -> (i32, i32) {
    %c0_i32 = arith.constant 0 : i32
    %c0_i32_0 = arith.constant 0 : i32
    return %arg0, %c0_i32 : i32, i32
  }
}

module attributes {stable_mosaic.version = 11 : i64} {
  func.func @ffn_kernel(%arg0: i32, %arg1: i32, %arg2: memref<16x128xf32, #tpu.memory_space<vmem>>, %arg3: memref<128x256xf32, #tpu.memory_space<vmem>>, %arg4: memref<1x256xf32, #tpu.memory_space<vmem>>, %arg5: memref<256x128xf32, #tpu.memory_space<vmem>>, %arg6: memref<1x128xf32, #tpu.memory_space<vmem>>, %arg7: memref<1x128xf32, #tpu.memory_space<vmem>>, %arg8: memref<1x128xf32, #tpu.memory_space<vmem>>, %arg9: memref<16x128xf32, #tpu.memory_space<vmem>>, %arg10: memref<16x128xf32, #tpu.memory_space<vmem>>) attributes {dimension_semantics = [#tpu.dimension_semantics<parallel>, #tpu.dimension_semantics<arbitrary>], iteration_bounds = array<i64: 1, 1>, scalar_prefetch = 0 : i64, scratch_operands = 1 : i64, tpu.core_type = #tpu.core_type<tc>, window_params = [{transform_indices = @transform_0, window_bounds = array<i64: 16, 128>}, {transform_indices = @transform_1, window_bounds = array<i64: 128, 256>}, {transform_indices = @transform_2, window_bounds = array<i64: 1, 256>}, {transform_indices = @transform_3, window_bounds = array<i64: 256, 128>}, {pipeline_mode = #tpu.pipeline_mode<synchronous>, transform_indices = @transform_4, window_bounds = array<i64: 1, 128>}, {pipeline_mode = #tpu.pipeline_mode<synchronous>, transform_indices = @transform_5, window_bounds = array<i64: 1, 128>}, {pipeline_mode = #tpu.pipeline_mode<synchronous>, transform_indices = @transform_6, window_bounds = array<i64: 1, 128>}, {transform_indices = @transform_7, window_bounds = array<i64: 16, 128>}]} {
    %c0_i32 = arith.constant 0 : i32
    %0 = arith.cmpi eq, %arg1, %c0_i32 : i32
    %1 = arith.extui %0 : i1 to i32
    %c0_i32_0 = arith.constant 0 : i32
    %2 = arith.cmpi ne, %1, %c0_i32_0 : i32
    scf.if %2 {
      %cst_16 = arith.constant 0.000000e+00 : f32
      %19 = vector.broadcast %cst_16 : f32 to vector<16x128xf32>
      %c0_17 = arith.constant 0 : index
      %c0_18 = arith.constant 0 : index
      %20 = vector.load %arg10[%c0_17, %c0_18] : memref<16x128xf32, #tpu.memory_space<vmem>>, vector<16x128xf32>
      tpu.vector_store %arg10[%c0_17, %c0_18], %19 {strides = array<i32>} : memref<16x128xf32, #tpu.memory_space<vmem>>, vector<16x128xf32>,
    } else {
    }
    %c0 = arith.constant 0 : index
    %c0_1 = arith.constant 0 : index
    %3 = vector.load %arg2[%c0, %c0_1] : memref<16x128xf32, #tpu.memory_space<vmem>>, vector<16x128xf32>
    %c0_2 = arith.constant 0 : index
    %c0_3 = arith.constant 0 : index
    %4 = vector.load %arg3[%c0_2, %c0_3] : memref<128x256xf32, #tpu.memory_space<vmem>>, vector<128x256xf32>
    %cst = arith.constant dense<0.000000e+00> : vector<16x256xf32>
    %5 = tpu.matmul %3, %4, %cst {dimension_numbers = #tpu.dot_dimension_numbers<[1], [0], [0], [1], [0, 0, 1, 1], [], []>} : vector<16x128xf32>, vector<128x256xf32>, vector<16x256xf32> -> vector<16x256xf32>
    %c0_4 = arith.constant 0 : index
    %c0_5 = arith.constant 0 : index
    %6 = vector.load %arg4[%c0_4, %c0_5] : memref<1x256xf32, #tpu.memory_space<vmem>>, vector<1x256xf32>
    %7 = vector.broadcast %6 : vector<1x256xf32> to vector<16x256xf32>
    %8 = arith.addf %5, %7 : vector<16x256xf32>
    %cst_6 = arith.constant 0.000000e+00 : f32
    %9 = vector.broadcast %cst_6 : f32 to vector<16x256xf32>
    %10 = arith.maximumf %8, %9 : vector<16x256xf32>
    %c0_7 = arith.constant 0 : index
    %c0_8 = arith.constant 0 : index
    %11 = vector.load %arg10[%c0_7, %c0_8] : memref<16x128xf32, #tpu.memory_space<vmem>>, vector<16x128xf32>
    %c0_9 = arith.constant 0 : index
    %c0_10 = arith.constant 0 : index
    %12 = vector.load %arg5[%c0_9, %c0_10] : memref<256x128xf32, #tpu.memory_space<vmem>>, vector<256x128xf32>
    %cst_11 = arith.constant dense<0.000000e+00> : vector<16x128xf32>
    %13 = tpu.matmul %10, %12, %cst_11 {dimension_numbers = #tpu.dot_dimension_numbers<[1], [0], [0], [1], [0, 0, 1, 1], [], []>} : vector<16x256xf32>, vector<256x128xf32>, vector<16x128xf32> -> vector<16x128xf32>
    %14 = arith.addf %11, %13 : vector<16x128xf32>
    %c0_12 = arith.constant 0 : index
    %c0_13 = arith.constant 0 : index
    %15 = vector.load %arg10[%c0_12, %c0_13] : memref<16x128xf32, #tpu.memory_space<vmem>>, vector<16x128xf32>
    tpu.vector_store %arg10[%c0_12, %c0_13], %14 {strides = array<i32>} : memref<16x128xf32, #tpu.memory_space<vmem>>, vector<16x128xf32>,
    %c0_i32_14 = arith.constant 0 : i32
    %16 = arith.cmpi eq, %arg1, %c0_i32_14 : i32
    %17 = arith.extui %16 : i1 to i32
    %c0_i32_15 = arith.constant 0 : i32
    %18 = arith.cmpi ne, %17, %c0_i32_15 : i32
    scf.if %18 {
      %c0_16 = arith.constant 0 : index
      %c0_17 = arith.constant 0 : index
      %19 = vector.load %arg10[%c0_16, %c0_17] : memref<16x128xf32, #tpu.memory_space<vmem>>, vector<16x128xf32>
      %c0_18 = arith.constant 0 : index
      %c0_19 = arith.constant 0 : index
      %20 = vector.load %arg6[%c0_18, %c0_19] : memref<1x128xf32, #tpu.memory_space<vmem>>, vector<1x128xf32>
      %21 = vector.broadcast %20 : vector<1x128xf32> to vector<16x128xf32>
      %22 = arith.addf %19, %21 : vector<16x128xf32>
      %c0_20 = arith.constant 0 : index
      %c0_21 = arith.constant 0 : index
      %23 = vector.load %arg2[%c0_20, %c0_21] : memref<16x128xf32, #tpu.memory_space<vmem>>, vector<16x128xf32>
      %24 = arith.addf %22, %23 : vector<16x128xf32>
      %cst_22 = arith.constant dense<0.000000e+00> : vector<16xf32>
      %25 = vector.multi_reduction <add>, %24, %cst_22 [1] : vector<16x128xf32> to vector<16xf32>
      %26 = vector.shape_cast %25 : vector<16xf32> to vector<16x1xf32>
      %cst_23 = arith.constant 1.280000e+02 : f32
      %27 = vector.broadcast %cst_23 : f32 to vector<16x1xf32>
      %28 = arith.divf %26, %27 : vector<16x1xf32>
      %29 = vector.broadcast %28 : vector<16x1xf32> to vector<16x128xf32>
      %30 = arith.subf %24, %29 : vector<16x128xf32>
      %31 = arith.mulf %30, %30 : vector<16x128xf32>
      %cst_24 = arith.constant dense<0.000000e+00> : vector<16xf32>
      %32 = vector.multi_reduction <add>, %31, %cst_24 [1] : vector<16x128xf32> to vector<16xf32>
      %33 = vector.shape_cast %32 : vector<16xf32> to vector<16x1xf32>
      %cst_25 = arith.constant 1.280000e+02 : f32
      %34 = vector.broadcast %cst_25 : f32 to vector<16x1xf32>
      %35 = arith.divf %33, %34 : vector<16x1xf32>
      %cst_26 = arith.constant 9.99999974E-6 : f32
      %36 = vector.broadcast %cst_26 : f32 to vector<16x1xf32>
      %37 = arith.addf %35, %36 : vector<16x1xf32>
      %38 = math.rsqrt %37 : vector<16x1xf32>
      %39 = vector.broadcast %38 : vector<16x1xf32> to vector<16x128xf32>
      %40 = arith.mulf %30, %39 : vector<16x128xf32>
      %c0_27 = arith.constant 0 : index
      %c0_28 = arith.constant 0 : index
      %41 = vector.load %arg7[%c0_27, %c0_28] : memref<1x128xf32, #tpu.memory_space<vmem>>, vector<1x128xf32>
      %42 = vector.broadcast %41 : vector<1x128xf32> to vector<16x128xf32>
      %43 = arith.mulf %40, %42 : vector<16x128xf32>
      %c0_29 = arith.constant 0 : index
      %c0_30 = arith.constant 0 : index
      %44 = vector.load %arg8[%c0_29, %c0_30] : memref<1x128xf32, #tpu.memory_space<vmem>>, vector<1x128xf32>
      %45 = vector.broadcast %44 : vector<1x128xf32> to vector<16x128xf32>
      %46 = arith.addf %43, %45 : vector<16x128xf32>
      %c0_31 = arith.constant 0 : index
      %c0_32 = arith.constant 0 : index
      %47 = vector.load %arg9[%c0_31, %c0_32] : memref<16x128xf32, #tpu.memory_space<vmem>>, vector<16x128xf32>
      tpu.vector_store %arg9[%c0_31, %c0_32], %46 {strides = array<i32>} : memref<16x128xf32, #tpu.memory_space<vmem>>, vector<16x128xf32>,
    } else {
    }
    return
  }
  func.func @transform_0(%arg0: i32, %arg1: i32) -> (i32, i32) {
    %c0_i32 = arith.constant 0 : i32
    %c0_i32_0 = arith.constant 0 : i32
    return %arg0, %c0_i32 : i32, i32
  }
  func.func @transform_1(%arg0: i32, %arg1: i32) -> (i32, i32) {
    %c0_i32 = arith.constant 0 : i32
    %c0_i32_0 = arith.constant 0 : i32
    return %c0_i32, %arg1 : i32, i32
  }
  func.func @transform_2(%arg0: i32, %arg1: i32) -> (i32, i32) {
    %c0_i32 = arith.constant 0 : i32
    %c0_i32_0 = arith.constant 0 : i32
    return %c0_i32, %arg1 : i32, i32
  }
  func.func @transform_3(%arg0: i32, %arg1: i32) -> (i32, i32) {
    %c0_i32 = arith.constant 0 : i32
    %c0_i32_0 = arith.constant 0 : i32
    return %arg1, %c0_i32 : i32, i32
  }
  func.func @transform_4(%arg0: i32, %arg1: i32) -> (i32, i32) {
    %c0_i32 = arith.constant 0 : i32
    %c0_i32_0 = arith.constant 0 : i32
    %c0_i32_1 = arith.constant 0 : i32
    return %c0_i32, %c0_i32_0 : i32, i32
  }
  func.func @transform_5(%arg0: i32, %arg1: i32) -> (i32, i32) {
    %c0_i32 = arith.constant 0 : i32
    %c0_i32_0 = arith.constant 0 : i32
    %c0_i32_1 = arith.constant 0 : i32
    return %c0_i32, %c0_i32_0 : i32, i32
  }
  func.func @transform_6(%arg0: i32, %arg1: i32) -> (i32, i32) {
    %c0_i32 = arith.constant 0 : i32
    %c0_i32_0 = arith.constant 0 : i32
    %c0_i32_1 = arith.constant 0 : i32
    return %c0_i32, %c0_i32_0 : i32, i32
  }
  func.func @transform_7(%arg0: i32, %arg1: i32) -> (i32, i32) {
    %c0_i32 = arith.constant 0 : i32
    %c0_i32_0 = arith.constant 0 : i32
    return %arg0, %c0_i32 : i32, i32
  }
}

</mosaic_0001>

<bundles_post_ra>
// kernel: tpu_custom_call.1
= control target key start
LH: loop header
LB: loop body
LE: loop exit
PB: predicated region body
PF: predicated region fallthrough
CT: control target
= control target key end

     0   :  { %12 = vsyncpa [#allocation4], 0  ;;  %s595_s0 = inlined_call_operand.hbm [shape: f32[16,128], index: 0, kind: input, shape index: {}]   ;;  %s596_s1 = inlined_call_operand.hbm [shape: f32[128,256], index: 1, kind: input, shape index: {}]   ;;  %s597_s2 = inlined_call_operand.hbm [shape: f32[1,256], index: 2, kind: input, shape index: {}]   ;;  %s598_s3 = inlined_call_operand.hbm [shape: f32[256,128], index: 3, kind: input, shape index: {}]   ;;  %s599_s4 = inlined_call_operand.vmem [shape: f32[1,128], index: 4, kind: input, shape index: {}]   ;;  %s600_s5 = inlined_call_operand.vmem [shape: f32[1,128], index: 5, kind: input, shape index: {}]   ;;  %s601_s6 = inlined_call_operand.vmem [shape: f32[1,128], index: 6, kind: input, shape index: {}]   ;;  %s602_s7 = inlined_call_operand.hbm [shape: f32[16,128], index: 7, kind: output, shape index: {}]  }
   0x1   :  { %13 = vsyncpa [#allocation7], 0 }
   0x2   :  { %14 = vsyncpa [#allocation10], 0  ;;  %s33_s26 = sshll.u32 %s596_s1, 4  ;;  %s34_s26 = int_to_ptr.hbm [resolvable:$true] %s33_s26 }
   0x3   :  { %15 = vsyncpa [#allocation5], 0  ;;  %s512_s27 = smov [#allocation6]   ;;  %s20_s8 = sshll.u32 %s595_s0, 4  ;;  %s21_s8 = int_to_ptr.hbm [resolvable:$true] %s20_s8 }
   0x4   :  { %s35_s28 = sshll.u32 %s512_s27, 4  ;;  %s513_s9 = smov 256   ;;  %s36_s28 = int_to_ptr.vmem [resolvable:$true] %s35_s28 }
   0x5   :  { %s514_s10 = smov 16   ;;  %s515_s11 = smov [#allocation3]  }
   0x6   :  { %41 = dma.hbm_to_vmem [thread:$0]  %s34_s26, 4096, %s36_s28, [#allocation7], %s513_s9, %s513_s9, %s514_s10  }
   0x7   :  { %s22_s12 = sshll.u32 %s515_s11, 4  ;;  %s516_s13 = smov 128   ;;  %s23_s12 = int_to_ptr.vmem [resolvable:$true] %s22_s12 }
   0x8   :  { %s517_s14 = smov 8   ;;  %s47_s16 = sshll.u32 %s597_s2, 4  ;;  %s48_s16 = int_to_ptr.hbm [resolvable:$true] %s47_s16 }
   0x9   :  { %28 = dma.hbm_to_vmem [thread:$0]  %s21_s8, 256, %s23_s12, [#allocation4], %s516_s13, %s516_s13, %s517_s14  }
   0xa   :  { %s518_s17 = smov [#allocation8]   ;;  %s57_s20 = sshll.u32 %s598_s3, 4  ;;  %s58_s20 = int_to_ptr.hbm [resolvable:$true] %s57_s20 }
   0xb   :  { %s49_s0 = sshll.u32 %s518_s17, 4  ;;  %s519_s21 = smov [#allocation9]   ;;  %s50_s0 = int_to_ptr.vmem [resolvable:$true] %s49_s0 }
   0xc   :  { %52 = dma.hbm_to_vmem [thread:$0]  %s48_s16, 32, %s50_s0, [#allocation7]  }
   0xd   :  { %s59_s22 = sshll.u32 %s519_s21, 4  ;;  %s60_s22 = int_to_ptr.vmem [resolvable:$true] %s59_s22 }
   0xe   :  { %65 = dma.hbm_to_vmem [thread:$0]  %s58_s20, 4096, %s60_s22, [#allocation10], %s516_s13, %s516_s13, %s517_s14  }
   0xf   :  { %504 = dma.done.wait [#allocation4], 256  }
  0x10   :  { %505 = vsyncadd [#allocation4], 4294967040 }
  0x11   :  { %506 = dma.done.wait [#allocation7], 4128  }
  0x12   :  { %507 = vsyncadd [#allocation7], 4294963168 }
  0x13   :  { %508 = dma.done.wait [#allocation10], 4096  }
  0x14   :  { %509 = vsyncadd [#allocation10], 4294963200  ;;  %v126_v0 = vld [vmem:[#allocation6 + $0xf0] sm:$0xff]  ;;  %v127_v1 = vld [vmem:[#allocation6 + $0xf8] sm:$0xff]  ;;  %s521_s26 = smov [#allocation11]   ;;  %s350_s29 = sshll.u32 %s602_s7, 4  ;;  %s351_s29 = int_to_ptr.hbm [resolvable:$true] %s350_s29 }
  0x15   :  { %v124_v2 = vld [vmem:[#allocation6 + $0xe0] sm:$0xff]  ;;  %134 = vmatpush.msra.mxu0 %v126_v0  ;;  %157 = vmatpush.msra.mxu1 %v127_v1  ;;  %v125_v3 = vld [vmem:[#allocation6 + $0xe8] sm:$0xff]  ;;  %v122_v4 = vld [vmem:[#allocation6 + $0xd0] sm:$0xff] }
  0x16   :  { %v123_v5 = vld [vmem:[#allocation6 + $0xd8] sm:$0xff]  ;;  %v120_v6 = vld [vmem:[#allocation6 + $0xc0] sm:$0xff]  ;;  %v121_v7 = vld [vmem:[#allocation6 + $0xc8] sm:$0xff] }
  0x17   :  { %135 = vmatpush.msra.mxu0 %v124_v2  ;;  %158 = vmatpush.msra.mxu1 %v125_v3  ;;  %v118_v8 = vld [vmem:[#allocation6 + $0xb0] sm:$0xff]  ;;  %v119_v9 = vld [vmem:[#allocation6 + $0xb8] sm:$0xff]  ;;  %v116_v10 = vld [vmem:[#allocation6 + $0xa0] sm:$0xff] }
  0x18   :  { %v117_v11 = vld [vmem:[#allocation6 + $0xa8] sm:$0xff]  ;;  %v114_v12 = vld [vmem:[#allocation6 + $0x90] sm:$0xff]  ;;  %v115_v13 = vld [vmem:[#allocation6 + $0x98] sm:$0xff] }
  0x19   :  { %136 = vmatpush.msra.mxu0 %v122_v4  ;;  %159 = vmatpush.msra.mxu1 %v123_v5  ;;  %v112_v14 = vld [vmem:[#allocation6 + $0x80] sm:$0xff]  ;;  %v113_v17 = vld [vmem:[#allocation6 + $0x88] sm:$0xff]  ;;  %v200_v18 = vld [vmem:[#allocation9 + $0x70] sm:$0xff] }
  0x1a   :  { %v201_v15 = vld [vmem:[#allocation9 + $0x78] sm:$0xff]  ;;  %v216_v19 = vld [vmem:[#allocation9 + $0xf0] sm:$0xff]  ;;  %v199_v20 = vld [vmem:[#allocation9 + $0x68] sm:$0xff] }
  0x1b   :  { %137 = vmatpush.msra.mxu0 %v120_v6  ;;  %160 = vmatpush.msra.mxu1 %v121_v7  ;;  %v217_v16 = vld [vmem:[#allocation9 + $0xf8] sm:$0xff]  ;;  %v215_v21 = vld [vmem:[#allocation9 + $0xe8] sm:$0xff]  ;;  %v198_v24 = vld [vmem:[#allocation9 + $0x60] sm:$0xff] }
  0x1c   :  { %218 = vmatpush.msra.mxu2 %v201_v15  ;;  %241 = vmatpush.msra.mxu3 %v217_v16  ;;  %v110_v22 = vld [vmem:[#allocation6 + $0x70] sm:$0xff]  ;;  %v111_v23 = vld [vmem:[#allocation6 + $0x78] sm:$0xff]  ;;  %v214_v25 = vld [vmem:[#allocation9 + $0xe0] sm:$0xff] }
  0x1d   :  { %138 = vmatpush.msra.mxu0 %v118_v8  ;;  %161 = vmatpush.msra.mxu1 %v119_v9  ;;  %v108_v26 = vld [vmem:[#allocation6 + $0x60] sm:$0xff]  ;;  %v109_v27 = vld [vmem:[#allocation6 + $0x68] sm:$0xff]  ;;  %v106_v30 = vld [vmem:[#allocation6 + $0x50] sm:$0xff] }
  0x1e   :  { %219 = vmatpush.msra.mxu2 %v200_v18  ;;  %242 = vmatpush.msra.mxu3 %v216_v19  ;;  %v197_v28 = vld [vmem:[#allocation9 + $0x58] sm:$0xff]  ;;  %v196_v33 = vld [vmem:[#allocation9 + $0x50] sm:$0xff]  ;;  %v105_v35 = vld [vmem:[#allocation6 + $0x48] sm:$0xff] }
  0x1f   :  { %139 = vmatpush.msra.mxu0 %v116_v10  ;;  %162 = vmatpush.msra.mxu1 %v117_v11  ;;  %v213_v29 = vld [vmem:[#allocation9 + $0xd8] sm:$0xff]  ;;  %v212_v34 = vld [vmem:[#allocation9 + $0xd0] sm:$0xff]  ;;  %v195_v36 = vld [vmem:[#allocation9 + $0x48] sm:$0xff] }
  0x20   :  { %220 = vmatpush.msra.mxu2 %v199_v20  ;;  %243 = vmatpush.msra.mxu3 %v215_v21  ;;  %v107_v31 = vld [vmem:[#allocation6 + $0x58] sm:$0xff]  ;;  %v104_v32 = vld [vmem:[#allocation6 + $0x40] sm:$0xff]  ;;  %v211_v37 = vld [vmem:[#allocation9 + $0xc8] sm:$0xff] }
  0x21   :  { %140 = vmatpush.msra.mxu0 %v114_v12  ;;  %163 = vmatpush.msra.mxu1 %v115_v13  ;;  %v102_v38 = vld [vmem:[#allocation6 + $0x30] sm:$0xff]  ;;  %v103_v39 = vld [vmem:[#allocation6 + $0x38] sm:$0xff]  ;;  %v194_v40 = vld [vmem:[#allocation9 + $0x40] sm:$0xff] }
  0x22   :  { %221 = vmatpush.msra.mxu2 %v198_v24  ;;  %244 = vmatpush.msra.mxu3 %v214_v25  ;;  %v210_v41 = vld [vmem:[#allocation9 + $0xc0] sm:$0xff]  ;;  %v193_v44 = vld [vmem:[#allocation9 + $0x38] sm:$0xff]  ;;  %v98_v46 = vld [vmem:[#allocation6 + $0x10] sm:$0xff] }
  0x23   :  { %141 = vmatpush.msra.mxu0 %v112_v14  ;;  %164 = vmatpush.msra.mxu1 %v113_v17  ;;  %v100_v42 = vld [vmem:[#allocation6 + $0x20] sm:$0xff]  ;;  %v101_v43 = vld [vmem:[#allocation6 + $0x28] sm:$0xff]  ;;  %v99_v47 = vld [vmem:[#allocation6 + $0x18] sm:$0xff] }
  0x24   :  { %222 = vmatpush.msra.mxu2 %v197_v28  ;;  %245 = vmatpush.msra.mxu3 %v213_v29  ;;  %v209_v45 = vld [vmem:[#allocation9 + $0xb8] sm:$0xff]  ;;  %v192_v48 = vld [vmem:[#allocation9 + $0x30] sm:$0xff]  ;;  %v97_v51 = vld [vmem:[#allocation6 + $0x8] sm:$0xff]  ;;  %v520_v28 = vmov 128.0  }
  0x25   :  { %142 = vmatpush.msra.mxu0 %v110_v22  ;;  %165 = vmatpush.msra.mxu1 %v111_v23  ;;  %v208_v49 = vld [vmem:[#allocation9 + $0xb0] sm:$0xff]  ;;  %v96_v50 = vld [vmem:[#allocation6] sm:$0xff]  ;;  %v191_v53 = vld [vmem:[#allocation9 + $0x28] sm:$0xff]  ;;  %378 = vrcp.f32 %v520_v28 }
  0x26   :  { %223 = vmatpush.msra.mxu2 %v196_v33  ;;  %246 = vmatpush.msra.mxu3 %v212_v34  ;;  %v94_v52 = vld [vmem:[#allocation3] sm:$0xff]  ;;  %v190_v55 = vld [vmem:[#allocation9 + $0x20] sm:$0xff]  ;;  %v189_v57 = vld [vmem:[#allocation9 + $0x18] sm:$0xff] }
  0x27   :  { %143 = vmatpush.msra.mxu0 %v108_v26  ;;  %166 = vmatpush.msra.mxu1 %v109_v27  ;;  %v207_v54 = vld [vmem:[#allocation9 + $0xa8] sm:$0xff]  ;;  %v206_v56 = vld [vmem:[#allocation9 + $0xa0] sm:$0xff]  ;;  %v205_v58 = vld [vmem:[#allocation9 + $0x98] sm:$0xff] }
  0x28   :  { %224 = vmatpush.msra.mxu2 %v195_v36  ;;  %247 = vmatpush.msra.mxu3 %v211_v37  ;;  %v95_v59 = vld [vmem:[#allocation3 + $0x8] sm:$0xff]  ;;  %v187_v62 = vld [vmem:[#allocation9 + $0x8] sm:$0xff]  ;;  %v186_v0 = vld [vmem:[#allocation9] sm:$0xff] }
  0x29   :  { %144 = vmatpush.msra.mxu0 %v106_v30  ;;  %167 = vmatpush.msra.mxu1 %v107_v31  ;;  %v188_v60 = vld [vmem:[#allocation9 + $0x10] sm:$0xff]  ;;  %v203_v63 = vld [vmem:[#allocation9 + $0x88] sm:$0xff]  ;;  %v202_v1 = vld [vmem:[#allocation9 + $0x80] sm:$0xff] }
  0x2a   :  { %225 = vmatpush.msra.mxu2 %v194_v40  ;;  %248 = vmatpush.msra.mxu3 %v210_v41  ;;  %v204_v61 = vld [vmem:[#allocation9 + $0x90] sm:$0xff]  ;;  %v128_v2 = vld [vmem:[#allocation8] sm:$0x3]  ;;  %v375_v17 = vld [vmem:[%s599_s4] ss:$0 sm:$0xff] }
  0x2b   :  { %145 = vmatpush.msra.mxu0 %v104_v32  ;;  %168 = vmatpush.msra.mxu1 %v105_v35  ;;  %v130_v3 = vperm.slane %v128_v2, 0  ;;  %v131_v4 = vperm.slane %v128_v2, 1  ;;  %v379_v29 = vpop.eup %378 }
  0x2c   :  { %226 = vmatpush.msra.mxu2 %v193_v44  ;;  %249 = vmatpush.msra.mxu3 %v209_v45  ;;  %v288_v30 = vmul.f32 128.0, %v379_v29  ;;  %vm292_vm0 = vweird.f32 %v379_v29 }
  0x2d   :  { %146 = vmatpush.msra.mxu0 %v102_v38  ;;  %169 = vmatpush.msra.mxu1 %v103_v39 }
  0x2e   :  { %227 = vmatpush.msra.mxu2 %v192_v48  ;;  %250 = vmatpush.msra.mxu3 %v208_v49  ;;  %v289_v31 = vsub.f32 1.0, %v288_v30 }
  0x2f   :  { %147 = vmatpush.msra.mxu0 %v100_v42  ;;  %170 = vmatpush.msra.mxu1 %v101_v43 }
  0x30   :  { %228 = vmatpush.msra.mxu2 %v191_v53  ;;  %251 = vmatpush.msra.mxu3 %v207_v54  ;;  %v290_v32 = vmul.f32 %v379_v29, %v289_v31 }
  0x31   :  { %148 = vmatpush.msra.mxu0 %v98_v46  ;;  %171 = vmatpush.msra.mxu1 %v99_v47 }
  0x32   :  { %229 = vmatpush.msra.mxu2 %v190_v55  ;;  %252 = vmatpush.msra.mxu3 %v206_v56  ;;  %v291_v33 = vadd.f32 %v379_v29, %v290_v32 }
  0x33   :  { %149 = vmatpush.msra.mxu0 %v96_v50  ;;  %172 = vmatpush.msra.mxu1 %v97_v51 }
  0x34   :  { %150 = vmatmul.f32.vlgmr.msra.gmra.mxu0 %v94_v52  ;;  %173 = vmatmul.f32.vlgmr.msra.gmra.mxu1 %v94_v52  ;;  %v293_v34 = vsel %vm292_vm0, %v379_v29, %v291_v33 }
  0x35   :  { %230 = vmatpush.msra.mxu2 %v189_v57  ;;  %253 = vmatpush.msra.mxu3 %v205_v58  ;;  %v376_v57 = vld [vmem:[%s600_s5] ss:$0 sm:$0xff]  ;;  %s348_s5 = sshll.u32 %s521_s26, 4  ;;  %s349_s5 = int_to_ptr.vmem [resolvable:$true] %s348_s5 }
  0x37   :  { %231 = vmatpush.msra.mxu2 %v188_v60  ;;  %254 = vmatpush.msra.mxu3 %v204_v61  ;;  %v377_v61 = vld [vmem:[%s601_s6] ss:$0 sm:$0xff] }
  0x39   :  { %232 = vmatpush.msra.mxu2 %v187_v62  ;;  %255 = vmatpush.msra.mxu3 %v203_v63 }
  0x3b   :  { %233 = vmatpush.msra.mxu2 %v186_v0  ;;  %256 = vmatpush.msra.mxu3 %v202_v1 }
  0x3c   :  { %153 = vmatmul.f32.gmra.mxu0 %v95_v59  ;;  %176 = vmatmul.f32.gmra.mxu1 %v95_v59 }
  0xb1   :  { %v151_v5 = vpop.f32.mrf.mxu0  ;;  %v174_v6 = vpop.f32.mrf.mxu1 }
  0xb2   :  { %v152_v7 = vadd.f32 %v151_v5, %v130_v3  ;;  %v175_v8 = vadd.f32 %v174_v6, %v131_v4 }
  0xb4   :  { %v180_v9 = vmax.f32 %v152_v7, 0.0  ;;  %v181_v10 = vmax.f32 %v175_v8, 0.0 }
  0xb6   :  { %234 = vmatmul.f32.vlgmr.msra.gmra.mxu2 %v180_v9  ;;  %257 = vmatmul.f32.vlgmr.msra.gmra.mxu3 %v181_v10 }
  0xb9   :  { %v154_v11 = vpop.f32.mrf.mxu0  ;;  %v177_v12 = vpop.f32.mrf.mxu1 }
  0xba   :  { %v155_v13 = vadd.f32 %v154_v11, %v130_v3  ;;  %v178_v14 = vadd.f32 %v177_v12, %v131_v4 }
  0xbc   :  { %v182_v15 = vmax.f32 %v155_v13, 0.0  ;;  %v183_v16 = vmax.f32 %v178_v14, 0.0 }
  0xbe   :  { %237 = vmatmul.f32.gmra.mxu2 %v182_v15  ;;  %260 = vmatmul.f32.gmra.mxu3 %v183_v16 }
 0x139   :  { %v235_v18 = vpop.f32.mrf.mxu2  ;;  %v258_v19 = vpop.f32.mrf.mxu3 }
 0x13a   :  { %v259_v20 = vadd.f32 %v258_v19, %v235_v18 }
 0x13c   :  { %v277_v21 = vadd.f32 %v375_v17, %v259_v20 }
 0x13e   :  { %v281_v22 = vadd.f32 %v277_v21, %v94_v52 }
 0x140   :  { %283 = vadd.xlane.f32.xlu0 %v281_v22 }
 0x141   :  { %v238_v23 = vpop.f32.mrf.mxu2  ;;  %v261_v24 = vpop.f32.mrf.mxu3 }
 0x142   :  { %v262_v25 = vadd.f32 %v261_v24, %v238_v23 }
 0x144   :  { %v278_v26 = vadd.f32 %v375_v17, %v262_v25 }
 0x146   :  { %v282_v27 = vadd.f32 %v278_v26, %v95_v59 }
 0x148   :  { %285 = vadd.xlane.f32.xlu0 %v282_v27 }
 0x1b3   :  { %v284_v35 = vpop.xlane.xlu0 %283 }
 0x1b4   :  { %v294_v36 = vmul.f32 %v293_v34, %v284_v35 }
 0x1b6   :  { %v296_v37 = vsub.f32 %v281_v22, %v294_v36 }
 0x1b8   :  { %v298_v38 = vmul.f32 %v296_v37, %v296_v37 }
 0x1ba   :  { %300 = vadd.xlane.f32.xlu1 %v298_v38 }
 0x1bb   :  { %v286_v39 = vpop.xlane.xlu0 %285 }
 0x1bc   :  { %v295_v40 = vmul.f32 %v293_v34, %v286_v39 }
 0x1be   :  { %v297_v41 = vsub.f32 %v282_v27, %v295_v40 }
 0x1c0   :  { %v299_v42 = vmul.f32 %v297_v41, %v297_v41 }
 0x1c2   :  { %302 = vadd.xlane.f32.xlu1 %v299_v42 }
 0x22d   :  { %v301_v43 = vpop.xlane.xlu1 %300 }
 0x22e   :  { %v304_v44 = vmul.f32 %v301_v43, %v293_v34 }
 0x230   :  { %v306_v45 = vadd.f32 1e-05, %v304_v44 }
 0x232   :  { %380 = vrsqrt.f32 %v306_v45  ;;  %vm314_vm2 = vweird.f32 %v306_v45 }
 0x235   :  { %v303_v46 = vpop.xlane.xlu1 %302 }
 0x236   :  { %v305_v47 = vmul.f32 %v303_v46, %v293_v34 }
 0x238   :  { %v381_v48 = vpop.eup %380  ;;  %v307_v49 = vadd.f32 1e-05, %v305_v47 }
 0x239   :  { %v309_v50 = vmul.f32 %v381_v48, %v306_v45  ;;  %vm315_vm1 = vweird.f32 %v381_v48 }
 0x23a   :  { %382 = vrsqrt.f32 %v307_v49  ;;  %vm316_vm3 = vmor %vm314_vm2, %vm315_vm1  ;;  %vm324_vm5 = vweird.f32 %v307_v49 }
 0x23b   :  { %v310_v51 = vmul.f32 %v381_v48, %v309_v50 }
 0x23d   :  { %v311_v52 = vmul.f32 0.5, %v310_v51 }
 0x23f   :  { %v312_v53 = vsub.f32 1.5, %v311_v52 }
 0x240   :  { %v383_v54 = vpop.eup %382 }
 0x241   :  { %v313_v55 = vmul.f32 %v381_v48, %v312_v53  ;;  %v319_v56 = vmul.f32 %v383_v54, %v307_v49  ;;  %vm325_vm4 = vweird.f32 %v383_v54 }
 0x242   :  { %vm326_vm6 = vmor %vm324_vm5, %vm325_vm4 }
 0x243   :  { %v317_v58 = vsel %vm316_vm3, %v381_v48, %v313_v55  ;;  %v320_v59 = vmul.f32 %v383_v54, %v319_v56 }
 0x244   :  { %v328_v60 = vmul.f32 %v317_v58, %v296_v37 }
 0x245   :  { %v321_v62 = vmul.f32 0.5, %v320_v59 }
 0x246   :  { %v334_v63 = vmul.f32 %v376_v57, %v328_v60 }
 0x247   :  { %v322_v0 = vsub.f32 1.5, %v321_v62 }
 0x248   :  { %v340_v1 = vadd.f32 %v377_v61, %v334_v63 }
 0x249   :  { %v323_v2 = vmul.f32 %v383_v54, %v322_v0 }
 0x24a   :  { %342 = vst [vmem:[#allocation11] sm:$0xff] %v340_v1 }
 0x24b   :  { %v327_v3 = vsel %vm326_vm6, %v383_v54, %v323_v2 }
 0x24c   :  { %v329_v4 = vmul.f32 %v327_v3, %v297_v41 }
 0x24e   :  { %v335_v5 = vmul.f32 %v376_v57, %v329_v4 }
 0x250   :  { %v341_v6 = vadd.f32 %v377_v61, %v335_v5 }
 0x252   :  { %343 = vst [vmem:[#allocation11 + $0x8] sm:$0xff] %v341_v6 }
 0x253   :  { %356 = dma.vmem_to_hbm [thread:$0]  %s349_s5, 256, %s351_s29, [#allocation5], %s516_s13, %s516_s13, %s517_s14  }
 0x254   :  { %510 = dma.done.wait [#allocation5], 256  }
 0x255   :  { %511 = vsyncadd [#allocation5], 4294967040 }
 0x256   :  { %361 = vsyncpa [#allocation4], 1 }
 0x257   :  { %362 = vsyncpa [#allocation7], 1 }
 0x258   :  { %363 = vsyncpa [#allocation10], 1 }
 0x259   :  { %364 = vsyncpa [#allocation5], 1 }

// kernel: tpu_custom_call.1
= control target key start
LH: loop header
LB: loop body
LE: loop exit
PB: predicated region body
PF: predicated region fallthrough
CT: control target
= control target key end

     0   :  { %12 = vsyncpa [#allocation4], 0  ;;  %s595_s0 = inlined_call_operand.hbm [shape: f32[16,128], index: 0, kind: input, shape index: {}]   ;;  %s596_s1 = inlined_call_operand.hbm [shape: f32[128,256], index: 1, kind: input, shape index: {}]   ;;  %s597_s2 = inlined_call_operand.hbm [shape: f32[1,256], index: 2, kind: input, shape index: {}]   ;;  %s598_s3 = inlined_call_operand.hbm [shape: f32[256,128], index: 3, kind: input, shape index: {}]   ;;  %s599_s4 = inlined_call_operand.vmem [shape: f32[1,128], index: 4, kind: input, shape index: {}]   ;;  %s600_s5 = inlined_call_operand.vmem [shape: f32[1,128], index: 5, kind: input, shape index: {}]   ;;  %s601_s6 = inlined_call_operand.vmem [shape: f32[1,128], index: 6, kind: input, shape index: {}]   ;;  %s602_s7 = inlined_call_operand.hbm [shape: f32[16,128], index: 7, kind: output, shape index: {}]  }
   0x1   :  { %13 = vsyncpa [#allocation7], 0 }
   0x2   :  { %14 = vsyncpa [#allocation10], 0  ;;  %s33_s26 = sshll.u32 %s596_s1, 4  ;;  %s34_s26 = int_to_ptr.hbm [resolvable:$true] %s33_s26 }
   0x3   :  { %15 = vsyncpa [#allocation5], 0  ;;  %s512_s27 = smov [#allocation6]   ;;  %s20_s8 = sshll.u32 %s595_s0, 4  ;;  %s21_s8 = int_to_ptr.hbm [resolvable:$true] %s20_s8 }
   0x4   :  { %s35_s28 = sshll.u32 %s512_s27, 4  ;;  %s513_s9 = smov 256   ;;  %s36_s28 = int_to_ptr.vmem [resolvable:$true] %s35_s28 }
   0x5   :  { %s514_s10 = smov 16   ;;  %s515_s11 = smov [#allocation3]  }
   0x6   :  { %41 = dma.hbm_to_vmem [thread:$0]  %s34_s26, 4096, %s36_s28, [#allocation7], %s513_s9, %s513_s9, %s514_s10  }
   0x7   :  { %s22_s12 = sshll.u32 %s515_s11, 4  ;;  %s516_s13 = smov 128   ;;  %s23_s12 = int_to_ptr.vmem [resolvable:$true] %s22_s12 }
   0x8   :  { %s517_s14 = smov 8   ;;  %s47_s16 = sshll.u32 %s597_s2, 4  ;;  %s48_s16 = int_to_ptr.hbm [resolvable:$true] %s47_s16 }
   0x9   :  { %28 = dma.hbm_to_vmem [thread:$0]  %s21_s8, 256, %s23_s12, [#allocation4], %s516_s13, %s516_s13, %s517_s14  }
   0xa   :  { %s518_s17 = smov [#allocation8]   ;;  %s57_s20 = sshll.u32 %s598_s3, 4  ;;  %s58_s20 = int_to_ptr.hbm [resolvable:$true] %s57_s20 }
   0xb   :  { %s49_s0 = sshll.u32 %s518_s17, 4  ;;  %s519_s21 = smov [#allocation9]   ;;  %s50_s0 = int_to_ptr.vmem [resolvable:$true] %s49_s0 }
   0xc   :  { %52 = dma.hbm_to_vmem [thread:$0]  %s48_s16, 32, %s50_s0, [#allocation7]  }
   0xd   :  { %s59_s22 = sshll.u32 %s519_s21, 4  ;;  %s60_s22 = int_to_ptr.vmem [resolvable:$true] %s59_s22 }
   0xe   :  { %65 = dma.hbm_to_vmem [thread:$0]  %s58_s20, 4096, %s60_s22, [#allocation10], %s516_s13, %s516_s13, %s517_s14  }
   0xf   :  { %504 = dma.done.wait [#allocation4], 256  }
  0x10   :  { %505 = vsyncadd [#allocation4], 4294967040 }
  0x11   :  { %506 = dma.done.wait [#allocation7], 4128  }
  0x12   :  { %507 = vsyncadd [#allocation7], 4294963168 }
  0x13   :  { %508 = dma.done.wait [#allocation10], 4096  }
  0x14   :  { %509 = vsyncadd [#allocation10], 4294963200  ;;  %v126_v0 = vld [vmem:[#allocation6 + $0xf0] sm:$0xff]  ;;  %v127_v1 = vld [vmem:[#allocation6 + $0xf8] sm:$0xff]  ;;  %s521_s26 = smov [#allocation11]   ;;  %s350_s29 = sshll.u32 %s602_s7, 4  ;;  %s351_s29 = int_to_ptr.hbm [resolvable:$true] %s350_s29 }
  0x15   :  { %v124_v2 = vld [vmem:[#allocation6 + $0xe0] sm:$0xff]  ;;  %134 = vmatpush.msra.mxu0 %v126_v0  ;;  %157 = vmatpush.msra.mxu1 %v127_v1  ;;  %v125_v3 = vld [vmem:[#allocation6 + $0xe8] sm:$0xff]  ;;  %v122_v4 = vld [vmem:[#allocation6 + $0xd0] sm:$0xff] }
  0x16   :  { %v123_v5 = vld [vmem:[#allocation6 + $0xd8] sm:$0xff]  ;;  %v120_v6 = vld [vmem:[#allocation6 + $0xc0] sm:$0xff]  ;;  %v121_v7 = vld [vmem:[#allocation6 + $0xc8] sm:$0xff] }
  0x17   :  { %135 = vmatpush.msra.mxu0 %v124_v2  ;;  %158 = vmatpush.msra.mxu1 %v125_v3  ;;  %v118_v8 = vld [vmem:[#allocation6 + $0xb0] sm:$0xff]  ;;  %v119_v9 = vld [vmem:[#allocation6 + $0xb8] sm:$0xff]  ;;  %v116_v10 = vld [vmem:[#allocation6 + $0xa0] sm:$0xff] }
  0x18   :  { %v117_v11 = vld [vmem:[#allocation6 + $0xa8] sm:$0xff]  ;;  %v114_v12 = vld [vmem:[#allocation6 + $0x90] sm:$0xff]  ;;  %v115_v13 = vld [vmem:[#allocation6 + $0x98] sm:$0xff] }
  0x19   :  { %136 = vmatpush.msra.mxu0 %v122_v4  ;;  %159 = vmatpush.msra.mxu1 %v123_v5  ;;  %v112_v14 = vld [vmem:[#allocation6 + $0x80] sm:$0xff]  ;;  %v113_v17 = vld [vmem:[#allocation6 + $0x88] sm:$0xff]  ;;  %v200_v18 = vld [vmem:[#allocation9 + $0x70] sm:$0xff] }
  0x1a   :  { %v201_v15 = vld [vmem:[#allocation9 + $0x78] sm:$0xff]  ;;  %v216_v19 = vld [vmem:[#allocation9 + $0xf0] sm:$0xff]  ;;  %v199_v20 = vld [vmem:[#allocation9 + $0x68] sm:$0xff] }
  0x1b   :  { %137 = vmatpush.msra.mxu0 %v120_v6  ;;  %160 = vmatpush.msra.mxu1 %v121_v7  ;;  %v217_v16 = vld [vmem:[#allocation9 + $0xf8] sm:$0xff]  ;;  %v215_v21 = vld [vmem:[#allocation9 + $0xe8] sm:$0xff]  ;;  %v198_v24 = vld [vmem:[#allocation9 + $0x60] sm:$0xff] }
  0x1c   :  { %218 = vmatpush.msra.mxu2 %v201_v15  ;;  %241 = vmatpush.msra.mxu3 %v217_v16  ;;  %v110_v22 = vld [vmem:[#allocation6 + $0x70] sm:$0xff]  ;;  %v111_v23 = vld [vmem:[#allocation6 + $0x78] sm:$0xff]  ;;  %v214_v25 = vld [vmem:[#allocation9 + $0xe0] sm:$0xff] }
  0x1d   :  { %138 = vmatpush.msra.mxu0 %v118_v8  ;;  %161 = vmatpush.msra.mxu1 %v119_v9  ;;  %v108_v26 = vld [vmem:[#allocation6 + $0x60] sm:$0xff]  ;;  %v109_v27 = vld [vmem:[#allocation6 + $0x68] sm:$0xff]  ;;  %v106_v30 = vld [vmem:[#allocation6 + $0x50] sm:$0xff] }
  0x1e   :  { %219 = vmatpush.msra.mxu2 %v200_v18  ;;  %242 = vmatpush.msra.mxu3 %v216_v19  ;;  %v197_v28 = vld [vmem:[#allocation9 + $0x58] sm:$0xff]  ;;  %v196_v33 = vld [vmem:[#allocation9 + $0x50] sm:$0xff]  ;;  %v105_v35 = vld [vmem:[#allocation6 + $0x48] sm:$0xff] }
  0x1f   :  { %139 = vmatpush.msra.mxu0 %v116_v10  ;;  %162 = vmatpush.msra.mxu1 %v117_v11  ;;  %v213_v29 = vld [vmem:[#allocation9 + $0xd8] sm:$0xff]  ;;  %v212_v34 = vld [vmem:[#allocation9 + $0xd0] sm:$0xff]  ;;  %v195_v36 = vld [vmem:[#allocation9 + $0x48] sm:$0xff] }
  0x20   :  { %220 = vmatpush.msra.mxu2 %v199_v20  ;;  %243 = vmatpush.msra.mxu3 %v215_v21  ;;  %v107_v31 = vld [vmem:[#allocation6 + $0x58] sm:$0xff]  ;;  %v104_v32 = vld [vmem:[#allocation6 + $0x40] sm:$0xff]  ;;  %v211_v37 = vld [vmem:[#allocation9 + $0xc8] sm:$0xff] }
  0x21   :  { %140 = vmatpush.msra.mxu0 %v114_v12  ;;  %163 = vmatpush.msra.mxu1 %v115_v13  ;;  %v102_v38 = vld [vmem:[#allocation6 + $0x30] sm:$0xff]  ;;  %v103_v39 = vld [vmem:[#allocation6 + $0x38] sm:$0xff]  ;;  %v194_v40 = vld [vmem:[#allocation9 + $0x40] sm:$0xff] }
  0x22   :  { %221 = vmatpush.msra.mxu2 %v198_v24  ;;  %244 = vmatpush.msra.mxu3 %v214_v25  ;;  %v210_v41 = vld [vmem:[#allocation9 + $0xc0] sm:$0xff]  ;;  %v193_v44 = vld [vmem:[#allocation9 + $0x38] sm:$0xff]  ;;  %v98_v46 = vld [vmem:[#allocation6 + $0x10] sm:$0xff] }
  0x23   :  { %141 = vmatpush.msra.mxu0 %v112_v14  ;;  %164 = vmatpush.msra.mxu1 %v113_v17  ;;  %v100_v42 = vld [vmem:[#allocation6 + $0x20] sm:$0xff]  ;;  %v101_v43 = vld [vmem:[#allocation6 + $0x28] sm:$0xff]  ;;  %v99_v47 = vld [vmem:[#allocation6 + $0x18] sm:$0xff] }
  0x24   :  { %222 = vmatpush.msra.mxu2 %v197_v28  ;;  %245 = vmatpush.msra.mxu3 %v213_v29  ;;  %v209_v45 = vld [vmem:[#allocation9 + $0xb8] sm:$0xff]  ;;  %v192_v48 = vld [vmem:[#allocation9 + $0x30] sm:$0xff]  ;;  %v97_v51 = vld [vmem:[#allocation6 + $0x8] sm:$0xff]  ;;  %v520_v28 = vmov 128.0  }
  0x25   :  { %142 = vmatpush.msra.mxu0 %v110_v22  ;;  %165 = vmatpush.msra.mxu1 %v111_v23  ;;  %v208_v49 = vld [vmem:[#allocation9 + $0xb0] sm:$0xff]  ;;  %v96_v50 = vld [vmem:[#allocation6] sm:$0xff]  ;;  %v191_v53 = vld [vmem:[#allocation9 + $0x28] sm:$0xff]  ;;  %378 = vrcp.f32 %v520_v28 }
  0x26   :  { %223 = vmatpush.msra.mxu2 %v196_v33  ;;  %246 = vmatpush.msra.mxu3 %v212_v34  ;;  %v94_v52 = vld [vmem:[#allocation3] sm:$0xff]  ;;  %v190_v55 = vld [vmem:[#allocation9 + $0x20] sm:$0xff]  ;;  %v189_v57 = vld [vmem:[#allocation9 + $0x18] sm:$0xff] }
  0x27   :  { %143 = vmatpush.msra.mxu0 %v108_v26  ;;  %166 = vmatpush.msra.mxu1 %v109_v27  ;;  %v207_v54 = vld [vmem:[#allocation9 + $0xa8] sm:$0xff]  ;;  %v206_v56 = vld [vmem:[#allocation9 + $0xa0] sm:$0xff]  ;;  %v205_v58 = vld [vmem:[#allocation9 + $0x98] sm:$0xff] }
  0x28   :  { %224 = vmatpush.msra.mxu2 %v195_v36  ;;  %247 = vmatpush.msra.mxu3 %v211_v37  ;;  %v95_v59 = vld [vmem:[#allocation3 + $0x8] sm:$0xff]  ;;  %v187_v62 = vld [vmem:[#allocation9 + $0x8] sm:$0xff]  ;;  %v186_v0 = vld [vmem:[#allocation9] sm:$0xff] }
  0x29   :  { %144 = vmatpush.msra.mxu0 %v106_v30  ;;  %167 = vmatpush.msra.mxu1 %v107_v31  ;;  %v188_v60 = vld [vmem:[#allocation9 + $0x10] sm:$0xff]  ;;  %v203_v63 = vld [vmem:[#allocation9 + $0x88] sm:$0xff]  ;;  %v202_v1 = vld [vmem:[#allocation9 + $0x80] sm:$0xff] }
  0x2a   :  { %225 = vmatpush.msra.mxu2 %v194_v40  ;;  %248 = vmatpush.msra.mxu3 %v210_v41  ;;  %v204_v61 = vld [vmem:[#allocation9 + $0x90] sm:$0xff]  ;;  %v128_v2 = vld [vmem:[#allocation8] sm:$0x3]  ;;  %v375_v17 = vld [vmem:[%s599_s4] ss:$0 sm:$0xff] }
  0x2b   :  { %145 = vmatpush.msra.mxu0 %v104_v32  ;;  %168 = vmatpush.msra.mxu1 %v105_v35  ;;  %v130_v3 = vperm.slane %v128_v2, 0  ;;  %v131_v4 = vperm.slane %v128_v2, 1  ;;  %v379_v29 = vpop.eup %378 }
  0x2c   :  { %226 = vmatpush.msra.mxu2 %v193_v44  ;;  %249 = vmatpush.msra.mxu3 %v209_v45  ;;  %v288_v30 = vmul.f32 128.0, %v379_v29  ;;  %vm292_vm0 = vweird.f32 %v379_v29 }
  0x2d   :  { %146 = vmatpush.msra.mxu0 %v102_v38  ;;  %169 = vmatpush.msra.mxu1 %v103_v39 }
  0x2e   :  { %227 = vmatpush.msra.mxu2 %v192_v48  ;;  %250 = vmatpush.msra.mxu3 %v208_v49  ;;  %v289_v31 = vsub.f32 1.0, %v288_v30 }
  0x2f   :  { %147 = vmatpush.msra.mxu0 %v100_v42  ;;  %170 = vmatpush.msra.mxu1 %v101_v43 }
  0x30   :  { %228 = vmatpush.msra.mxu2 %v191_v53  ;;  %251 = vmatpush.msra.mxu3 %v207_v54  ;;  %v290_v32 = vmul.f32 %v379_v29, %v289_v31 }
  0x31   :  { %148 = vmatpush.msra.mxu0 %v98_v46  ;;  %171 = vmatpush.msra.mxu1 %v99_v47 }
  0x32   :  { %229 = vmatpush.msra.mxu2 %v190_v55  ;;  %252 = vmatpush.msra.mxu3 %v206_v56  ;;  %v291_v33 = vadd.f32 %v379_v29, %v290_v32 }
  0x33   :  { %149 = vmatpush.msra.mxu0 %v96_v50  ;;  %172 = vmatpush.msra.mxu1 %v97_v51 }
  0x34   :  { %150 = vmatmul.f32.vlgmr.msra.gmra.mxu0 %v94_v52  ;;  %173 = vmatmul.f32.vlgmr.msra.gmra.mxu1 %v94_v52  ;;  %v293_v34 = vsel %vm292_vm0, %v379_v29, %v291_v33 }
  0x35   :  { %230 = vmatpush.msra.mxu2 %v189_v57  ;;  %253 = vmatpush.msra.mxu3 %v205_v58  ;;  %v376_v57 = vld [vmem:[%s600_s5] ss:$0 sm:$0xff]  ;;  %s348_s5 = sshll.u32 %s521_s26, 4  ;;  %s349_s5 = int_to_ptr.vmem [resolvable:$true] %s348_s5 }
  0x37   :  { %231 = vmatpush.msra.mxu2 %v188_v60  ;;  %254 = vmatpush.msra.mxu3 %v204_v61  ;;  %v377_v61 = vld [vmem:[%s601_s6] ss:$0 sm:$0xff] }
  0x39   :  { %232 = vmatpush.msra.mxu2 %v187_v62  ;;  %255 = vmatpush.msra.mxu3 %v203_v63 }
  0x3b   :  { %233 = vmatpush.msra.mxu2 %v186_v0  ;;  %256 = vmatpush.msra.mxu3 %v202_v1 }
  0x3c   :  { %153 = vmatmul.f32.gmra.mxu0 %v95_v59  ;;  %176 = vmatmul.f32.gmra.mxu1 %v95_v59 }
  0xb1   :  { %v151_v5 = vpop.f32.mrf.mxu0  ;;  %v174_v6 = vpop.f32.mrf.mxu1 }
  0xb2   :  { %v152_v7 = vadd.f32 %v151_v5, %v130_v3  ;;  %v175_v8 = vadd.f32 %v174_v6, %v131_v4 }
  0xb4   :  { %v180_v9 = vmax.f32 %v152_v7, 0.0  ;;  %v181_v10 = vmax.f32 %v175_v8, 0.0 }
  0xb6   :  { %234 = vmatmul.f32.vlgmr.msra.gmra.mxu2 %v180_v9  ;;  %257 = vmatmul.f32.vlgmr.msra.gmra.mxu3 %v181_v10 }
  0xb9   :  { %v154_v11 = vpop.f32.mrf.mxu0  ;;  %v177_v12 = vpop.f32.mrf.mxu1 }
  0xba   :  { %v155_v13 = vadd.f32 %v154_v11, %v130_v3  ;;  %v178_v14 = vadd.f32 %v177_v12, %v131_v4 }
  0xbc   :  { %v182_v15 = vmax.f32 %v155_v13, 0.0  ;;  %v183_v16 = vmax.f32 %v178_v14, 0.0 }
  0xbe   :  { %237 = vmatmul.f32.gmra.mxu2 %v182_v15  ;;  %260 = vmatmul.f32.gmra.mxu3 %v183_v16 }
 0x139   :  { %v235_v18 = vpop.f32.mrf.mxu2  ;;  %v258_v19 = vpop.f32.mrf.mxu3 }
 0x13a   :  { %v259_v20 = vadd.f32 %v258_v19, %v235_v18 }
 0x13c   :  { %v277_v21 = vadd.f32 %v375_v17, %v259_v20 }
 0x13e   :  { %v281_v22 = vadd.f32 %v277_v21, %v94_v52 }
 0x140   :  { %283 = vadd.xlane.f32.xlu0 %v281_v22 }
 0x141   :  { %v238_v23 = vpop.f32.mrf.mxu2  ;;  %v261_v24 = vpop.f32.mrf.mxu3 }
 0x142   :  { %v262_v25 = vadd.f32 %v261_v24, %v238_v23 }
 0x144   :  { %v278_v26 = vadd.f32 %v375_v17, %v262_v25 }
 0x146   :  { %v282_v27 = vadd.f32 %v278_v26, %v95_v59 }
 0x148   :  { %285 = vadd.xlane.f32.xlu0 %v282_v27 }
 0x1b3   :  { %v284_v35 = vpop.xlane.xlu0 %283 }
 0x1b4   :  { %v294_v36 = vmul.f32 %v293_v34, %v284_v35 }
 0x1b6   :  { %v296_v37 = vsub.f32 %v281_v22, %v294_v36 }
 0x1b8   :  { %v298_v38 = vmul.f32 %v296_v37, %v296_v37 }
 0x1ba   :  { %300 = vadd.xlane.f32.xlu1 %v298_v38 }
 0x1bb   :  { %v286_v39 = vpop.xlane.xlu0 %285 }
 0x1bc   :  { %v295_v40 = vmul.f32 %v293_v34, %v286_v39 }
 0x1be   :  { %v297_v41 = vsub.f32 %v282_v27, %v295_v40 }
 0x1c0   :  { %v299_v42 = vmul.f32 %v297_v41, %v297_v41 }
 0x1c2   :  { %302 = vadd.xlane.f32.xlu1 %v299_v42 }
 0x22d   :  { %v301_v43 = vpop.xlane.xlu1 %300 }
 0x22e   :  { %v304_v44 = vmul.f32 %v301_v43, %v293_v34 }
 0x230   :  { %v306_v45 = vadd.f32 1e-05, %v304_v44 }
 0x232   :  { %380 = vrsqrt.f32 %v306_v45  ;;  %vm314_vm2 = vweird.f32 %v306_v45 }
 0x235   :  { %v303_v46 = vpop.xlane.xlu1 %302 }
 0x236   :  { %v305_v47 = vmul.f32 %v303_v46, %v293_v34 }
 0x238   :  { %v381_v48 = vpop.eup %380  ;;  %v307_v49 = vadd.f32 1e-05, %v305_v47 }
 0x239   :  { %v309_v50 = vmul.f32 %v381_v48, %v306_v45  ;;  %vm315_vm1 = vweird.f32 %v381_v48 }
 0x23a   :  { %382 = vrsqrt.f32 %v307_v49  ;;  %vm316_vm3 = vmor %vm314_vm2, %vm315_vm1  ;;  %vm324_vm5 = vweird.f32 %v307_v49 }
 0x23b   :  { %v310_v51 = vmul.f32 %v381_v48, %v309_v50 }
 0x23d   :  { %v311_v52 = vmul.f32 0.5, %v310_v51 }
 0x23f   :  { %v312_v53 = vsub.f32 1.5, %v311_v52 }
 0x240   :  { %v383_v54 = vpop.eup %382 }
 0x241   :  { %v313_v55 = vmul.f32 %v381_v48, %v312_v53  ;;  %v319_v56 = vmul.f32 %v383_v54, %v307_v49  ;;  %vm325_vm4 = vweird.f32 %v383_v54 }
 0x242   :  { %vm326_vm6 = vmor %vm324_vm5, %vm325_vm4 }
 0x243   :  { %v317_v58 = vsel %vm316_vm3, %v381_v48, %v313_v55  ;;  %v320_v59 = vmul.f32 %v383_v54, %v319_v56 }
 0x244   :  { %v328_v60 = vmul.f32 %v317_v58, %v296_v37 }
 0x245   :  { %v321_v62 = vmul.f32 0.5, %v320_v59 }
 0x246   :  { %v334_v63 = vmul.f32 %v376_v57, %v328_v60 }
 0x247   :  { %v322_v0 = vsub.f32 1.5, %v321_v62 }
 0x248   :  { %v340_v1 = vadd.f32 %v377_v61, %v334_v63 }
 0x249   :  { %v323_v2 = vmul.f32 %v383_v54, %v322_v0 }
 0x24a   :  { %342 = vst [vmem:[#allocation11] sm:$0xff] %v340_v1 }
 0x24b   :  { %v327_v3 = vsel %vm326_vm6, %v383_v54, %v323_v2 }
 0x24c   :  { %v329_v4 = vmul.f32 %v327_v3, %v297_v41 }
 0x24e   :  { %v335_v5 = vmul.f32 %v376_v57, %v329_v4 }
 0x250   :  { %v341_v6 = vadd.f32 %v377_v61, %v335_v5 }
 0x252   :  { %343 = vst [vmem:[#allocation11 + $0x8] sm:$0xff] %v341_v6 }
 0x253   :  { %356 = dma.vmem_to_hbm [thread:$0]  %s349_s5, 256, %s351_s29, [#allocation5], %s516_s13, %s516_s13, %s517_s14  }
 0x254   :  { %510 = dma.done.wait [#allocation5], 256  }
 0x255   :  { %511 = vsyncadd [#allocation5], 4294967040 }
 0x256   :  { %361 = vsyncpa [#allocation4], 1 }
 0x257   :  { %362 = vsyncpa [#allocation7], 1 }
 0x258   :  { %363 = vsyncpa [#allocation10], 1 }
 0x259   :  { %364 = vsyncpa [#allocation5], 1 }

</bundles_post_ra>
